<compile_context>
chip_gen: v7x
topology: tpu7x:2x2x1
jax: 0.10.0
libtpu: 0.0.40
codegen_flags: <defaults>
</compile_context>

<pallas_src>
import functools
import math

import jax
import jax.numpy as jnp
from jax.experimental import pallas as pl
from jax.experimental.pallas import tpu as pltpu


LANE = 128        # TPU lane width; feature dims padded to a multiple of this.
SUBLANE = 8       # sublane height; batch tiles padded to a multiple of this.
GRIDLESS_MAX_B = 127  # above this, always use a >=2-tile parallel grid (v7x).


def _round_up(n: int, m: int) -> int:
    return ((n + m - 1) // m) * m


def _cdiv(a: int, b: int) -> int:
    return -(-a // b)


def _vmem_budget_bytes() -> int:
    """Conservative per-call VMEM budget (stays under the scoped default)."""
    try:
        info = pltpu.get_tpu_info()
        cap = int(getattr(info, "vmem_capacity_bytes", 64 << 20))
    except Exception:  # interpret mode / older runtimes
        cap = 64 << 20
    return cap // 4


# ----------------------------------------------------------------------------
# Fused Pallas kernel: the whole Linear/ReLU stack in one body
# ----------------------------------------------------------------------------
def _mlp_fused_kernel(*refs, num_layers: int):
    # refs = (x_ref, w1, b1, w2, b2, ..., wN, bN, o_ref)
    x_ref = refs[0]
    o_ref = refs[-1]
    wb = refs[1:-1]

    h = x_ref[...]  # (TB, IN_pad), streaming dtype (bf16)
    for li in range(num_layers):
        w = wb[2 * li][...]                          # (IN_pad, OUT_pad)
        b = wb[2 * li + 1][...].astype(jnp.float32)  # (1, OUT_pad)
        # MXU matmul with f32 accumulation; bias + ReLU stay on the f32 acc.
        h = jnp.dot(h, w, preferred_element_type=jnp.float32) + b
        if li != num_layers - 1:
            # ReLU on f32, then back to the stream dtype so the next MXU pass
            # runs at native bf16 rate.
            h = jnp.maximum(h, 0.0).astype(w.dtype)
    # Single downcast + lane-dense store at the very end.
    o_ref[...] = h.astype(o_ref.dtype)


def mlp_fused_pallas(x2d, padded_params, *, max_batch_tile: int = 1024):
    """Run the full padded MLP stack in one pallas_call.

    x2d:            (B, IN_pad), IN_pad a multiple of 128, streaming dtype.
    padded_params:  list of (W_pad (IN_pad, OUT_pad), b_pad (1, OUT_pad)).
    Returns (B, OUT_pad_last) in the streaming dtype.
    """
    B, IN_p = x2d.shape
    OUT_p = padded_params[-1][0].shape[1]
    n_layers = len(padded_params)
    flat_wb = [a for wb in padded_params for a in wb]
    kernel = functools.partial(_mlp_fused_kernel, num_layers=n_layers)

    itemsize = x2d.dtype.itemsize
    weight_bytes = sum(
        w.size * w.dtype.itemsize + b.size * b.dtype.itemsize
        for (w, b) in padded_params
    )
    max_w = max([IN_p] + [w.shape[1] for (w, _) in padded_params])
    budget = _vmem_budget_bytes()

    # ---- Gridless path: small batches, everything resident in VMEM. -------
    # Guarded by batch size (so moderate batches get a parallel grid on v7x)
    # and by a VMEM-footprint estimate (x + out + weights + f32 temps).
    gridless_bytes = (
        B * (IN_p + OUT_p) * itemsize + weight_bytes + 2 * B * max_w * 4
    )
    if B <= GRIDLESS_MAX_B and gridless_bytes <= budget:
        return pl.pallas_call(
            kernel,
            out_shape=jax.ShapeDtypeStruct((B, OUT_p), x2d.dtype),
            in_specs=[pl.BlockSpec(memory_space=pltpu.MemorySpace.VMEM)]
            * (1 + 2 * n_layers),
            out_specs=pl.BlockSpec(memory_space=pltpu.MemorySpace.VMEM),
        )(x2d, *flat_wb)

    # ---- Batch-tiled path: weights resident, x/out stream by row tiles. ---
    # Adaptive tile: at least 2 tiles (so v7x's two TensorCores both get work),
    # tile rows a multiple of 8, capped by max_batch_tile and the VMEM budget.
    n_tiles = max(2, _cdiv(B, max_batch_tile))
    TB = _round_up(_cdiv(B, n_tiles), SUBLANE)

    def tiled_bytes(tb):
        # double-buffered x/out tiles + (double-buffered) weights + f32 temps
        return (2 * tb * (IN_p + OUT_p) * itemsize
                + 2 * weight_bytes
                + 2 * tb * max_w * 4)

    while TB > SUBLANE and tiled_bytes(TB) > budget:
        TB = _round_up(TB // 2, SUBLANE)

    n_tiles = _cdiv(B, TB)
    B_p = n_tiles * TB                      # waste < 8 rows per tile
    xp = x2d if B_p == B else jnp.pad(x2d, ((0, B_p - B), (0, 0)))

    in_specs = [pl.BlockSpec((TB, IN_p), lambda i: (i, 0))]
    for (w, b) in padded_params:
        # Constant index_map: weights stay resident across grid steps.
        # TODO(synk): pipeline_mode=pl.Buffered(1) on these would save the
        # unused second pipeline buffer; left at default for portability.
        in_specs.append(pl.BlockSpec(w.shape, lambda i: (0, 0)))
        in_specs.append(pl.BlockSpec(b.shape, lambda i: (0, 0)))

    out = pl.pallas_call(
        kernel,
        out_shape=jax.ShapeDtypeStruct((B_p, OUT_p), x2d.dtype),
        grid=(n_tiles,),
        in_specs=in_specs,
        out_specs=pl.BlockSpec((TB, OUT_p), lambda i: (i, 0)),
        compiler_params=pltpu.CompilerParams(
            dimension_semantics=("parallel",)
        ),
    )(xp, *flat_wb)
    return out[:B]


# ----------------------------------------------------------------------------
# Parameter init (mirrors nn.Linear) + ONE-TIME padding / dtype prep
# ----------------------------------------------------------------------------
def init_mlp_params(key, input_size, hidden_layers, hidden_size, output_size,
                    dtype=jnp.float32):
    """Deterministic init matching nn.Linear's U(-1/sqrt(fan_in), 1/sqrt(fan_in))."""
    if hidden_layers == 0:
        dims = [(input_size, output_size)]
    else:
        dims = [(input_size, hidden_size)]
        for _ in range(hidden_layers - 1):
            dims.append((hidden_size, hidden_size))
        dims.append((hidden_size, output_size))

    params = []
    for (fan_in, fan_out) in dims:
        key, kw, kb = jax.random.split(key, 3)
        bound = 1.0 / math.sqrt(fan_in)
        # stored pre-transposed as (IN, OUT) so the kernel does x @ W directly
        w_t = jax.random.uniform(kw, (fan_in, fan_out), dtype=dtype,
                                 minval=-bound, maxval=bound)
        b = jax.random.uniform(kb, (fan_out,), dtype=dtype,
                               minval=-bound, maxval=bound)
        params.append((w_t, b))
    return params


def prepare_mlp_params(params, stream_dtype=jnp.bfloat16, lane=LANE):
    """ONE-TIME: zero-pad each (IN, OUT) weight / (OUT,) bias to lane multiples
    and cast to the streaming dtype.  Call at model-setup time; the jitted
    forward reuses these stable buffers on every call.

    Zero padding is exact: padded activation columns stay 0 through bias add
    (bias pad = 0) and ReLU, and padded weight rows multiply those zeros.
    """
    padded = []
    for (w_t, b) in params:
        fan_in, fan_out = w_t.shape
        in_p, out_p = _round_up(fan_in, lane), _round_up(fan_out, lane)
        w_p = (jnp.zeros((in_p, out_p), stream_dtype)
               .at[:fan_in, :fan_out].set(w_t.astype(stream_dtype)))
        b_p = (jnp.zeros((1, out_p), stream_dtype)
               .at[0, :fan_out].set(b.astype(stream_dtype)))
        padded.append((w_p, b_p))
    return padded


# ----------------------------------------------------------------------------
# Forward pass (== MLP.forward)
# ----------------------------------------------------------------------------
def mlp_forward(padded_params, x, *, out_features):
    """x: NCHW tensor. Flatten to (B, -1), run the fused Linear/ReLU stack on
    pre-padded params, slice the real logits and upcast to f32."""
    B = x.shape[0]
    h = x.reshape(B, -1)                         # == x.view(x.size(0), -1)
    stream_dtype = padded_params[0][0].dtype
    h = h.astype(stream_dtype)

    in_dim = h.shape[1]
    IN_p = padded_params[0][0].shape[0]
    if IN_p != in_dim:
        h = jnp.pad(h, ((0, 0), (0, IN_p - in_dim)))

    out_padded = mlp_fused_pallas(h, padded_params)
    return out_padded[:, :out_features].astype(jnp.float32)


# ----------------------------------------------------------------------------
# Main
# ----------------------------------------------------------------------------
if __name__ == "__main__":
    key = jax.random.PRNGKey(0)

    # Small, module-consistent shapes: B=8 images of 1x16x16 -> input_size=256
    B, C, H, W = 8, 1, 16, 16
    input_size = C * H * W
    hidden_layers = 2
    hidden_size = 32
    output_size = 10
    stream_dtype = jnp.bfloat16

    key, kx = jax.random.split(key)
    x = jax.random.normal(kx, (B, C, H, W), dtype=jnp.float32)

    params = init_mlp_params(key, input_size, hidden_layers, hidden_size,
                             output_size)
    # One-time padding / cast (hoisted out of the jitted forward).
    padded_params = prepare_mlp_params(params, stream_dtype=stream_dtype)

    fwd = jax.jit(functools.partial(mlp_forward, out_features=output_size))
    out = fwd(padded_params, x)
    out = jax.block_until_ready(out)

    # --- Sanity 1: mirror reference (same bf16 streaming, f32 accumulation) --
    h_mirror = x.reshape(B, -1).astype(stream_dtype)
    for li, (w_t, b) in enumerate(params):
        w_s = w_t.astype(stream_dtype)
        b_s = b.astype(stream_dtype).astype(jnp.float32)
        h_mirror = jnp.dot(h_mirror, w_s,
                           preferred_element_type=jnp.float32) + b_s
        if li != len(params) - 1:
            h_mirror = jnp.maximum(h_mirror, 0.0).astype(stream_dtype)
    h_mirror = h_mirror.astype(jnp.float32)

    # --- Sanity 2: pure-f32 reference of the exact PyTorch forward semantics -
    h_f32 = x.reshape(B, -1)
    for li, (w_t, b) in enumerate(params):
        h_f32 = h_f32 @ w_t + b
        if li != len(params) - 1:
            h_f32 = jnp.maximum(h_f32, 0.0)

    assert out.shape == (B, output_size)
    assert jnp.allclose(out, h_mirror, atol=1e-3, rtol=1e-3)
    assert jnp.allclose(out, h_f32, atol=3e-2, rtol=3e-2)

    print("KERNEL_OK")
</pallas_src>

<mosaic_0001>
module attributes {stable_mosaic.version = 11 : i64} {
  func.func @_mlp_fused_kernel(%arg0: memref<8x256xbf16, #tpu.memory_space<vmem>>, %arg1: memref<256x128xbf16, #tpu.memory_space<vmem>>, %arg2: memref<1x128xbf16, #tpu.memory_space<vmem>>, %arg3: memref<128x128xbf16, #tpu.memory_space<vmem>>, %arg4: memref<1x128xbf16, #tpu.memory_space<vmem>>, %arg5: memref<128x128xbf16, #tpu.memory_space<vmem>>, %arg6: memref<1x128xbf16, #tpu.memory_space<vmem>>, %arg7: memref<8x128xbf16, #tpu.memory_space<vmem>>) attributes {dimension_semantics = [], scalar_prefetch = 0 : i64, scratch_operands = 0 : i64, tpu.core_type = #tpu.core_type<tc>} {
    %c0 = arith.constant 0 : index
    %c0_0 = arith.constant 0 : index
    %0 = vector.load %arg0[%c0, %c0_0] : memref<8x256xbf16, #tpu.memory_space<vmem>>, vector<8x256xbf16>
    %c0_1 = arith.constant 0 : index
    %c0_2 = arith.constant 0 : index
    %1 = vector.load %arg1[%c0_1, %c0_2] : memref<256x128xbf16, #tpu.memory_space<vmem>>, vector<256x128xbf16>
    %c0_3 = arith.constant 0 : index
    %c0_4 = arith.constant 0 : index
    %2 = vector.load %arg2[%c0_3, %c0_4] : memref<1x128xbf16, #tpu.memory_space<vmem>>, vector<1x128xbf16>
    %3 = arith.extf %2 : vector<1x128xbf16> to vector<1x128xf32>
    %cst = arith.constant dense<0.000000e+00> : vector<8x128xf32>
    %4 = tpu.matmul %0, %1, %cst {dimension_numbers = #tpu.dot_dimension_numbers<[1], [0], [0], [1], [0, 0, 1, 1], [], []>} : vector<8x256xbf16>, vector<256x128xbf16>, vector<8x128xf32> -> vector<8x128xf32>
    %5 = vector.broadcast %3 : vector<1x128xf32> to vector<8x128xf32>
    %6 = arith.addf %4, %5 : vector<8x128xf32>
    %cst_5 = arith.constant 0.000000e+00 : f32
    %7 = vector.broadcast %cst_5 : f32 to vector<8x128xf32>
    %8 = arith.maximumf %6, %7 : vector<8x128xf32>
    %9 = arith.truncf %8 : vector<8x128xf32> to vector<8x128xbf16>
    %c0_6 = arith.constant 0 : index
    %c0_7 = arith.constant 0 : index
    %10 = vector.load %arg3[%c0_6, %c0_7] : memref<128x128xbf16, #tpu.memory_space<vmem>>, vector<128x128xbf16>
    %c0_8 = arith.constant 0 : index
    %c0_9 = arith.constant 0 : index
    %11 = vector.load %arg4[%c0_8, %c0_9] : memref<1x128xbf16, #tpu.memory_space<vmem>>, vector<1x128xbf16>
    %12 = arith.extf %11 : vector<1x128xbf16> to vector<1x128xf32>
    %cst_10 = arith.constant dense<0.000000e+00> : vector<8x128xf32>
    %13 = tpu.matmul %9, %10, %cst_10 {dimension_numbers = #tpu.dot_dimension_numbers<[1], [0], [0], [1], [0, 0, 1, 1], [], []>} : vector<8x128xbf16>, vector<128x128xbf16>, vector<8x128xf32> -> vector<8x128xf32>
    %14 = vector.broadcast %12 : vector<1x128xf32> to vector<8x128xf32>
    %15 = arith.addf %13, %14 : vector<8x128xf32>
    %cst_11 = arith.constant 0.000000e+00 : f32
    %16 = vector.broadcast %cst_11 : f32 to vector<8x128xf32>
    %17 = arith.maximumf %15, %16 : vector<8x128xf32>
    %18 = arith.truncf %17 : vector<8x128xf32> to vector<8x128xbf16>
    %c0_12 = arith.constant 0 : index
    %c0_13 = arith.constant 0 : index
    %19 = vector.load %arg5[%c0_12, %c0_13] : memref<128x128xbf16, #tpu.memory_space<vmem>>, vector<128x128xbf16>
    %c0_14 = arith.constant 0 : index
    %c0_15 = arith.constant 0 : index
    %20 = vector.load %arg6[%c0_14, %c0_15] : memref<1x128xbf16, #tpu.memory_space<vmem>>, vector<1x128xbf16>
    %21 = arith.extf %20 : vector<1x128xbf16> to vector<1x128xf32>
    %cst_16 = arith.constant dense<0.000000e+00> : vector<8x128xf32>
    %22 = tpu.matmul %18, %19, %cst_16 {dimension_numbers = #tpu.dot_dimension_numbers<[1], [0], [0], [1], [0, 0, 1, 1], [], []>} : vector<8x128xbf16>, vector<128x128xbf16>, vector<8x128xf32> -> vector<8x128xf32>
    %23 = vector.broadcast %21 : vector<1x128xf32> to vector<8x128xf32>
    %24 = arith.addf %22, %23 : vector<8x128xf32>
    %25 = arith.truncf %24 : vector<8x128xf32> to vector<8x128xbf16>
    %c0_17 = arith.constant 0 : index
    %c0_18 = arith.constant 0 : index
    %26 = vector.load %arg7[%c0_17, %c0_18] : memref<8x128xbf16, #tpu.memory_space<vmem>>, vector<8x128xbf16>
    tpu.vector_store %arg7[%c0_17, %c0_18], %25 {strides = array<i32>} : memref<8x128xbf16, #tpu.memory_space<vmem>>, vector<8x128xbf16>,
    return
  }
}

</mosaic_0001>

<bundles_post_ra>
// kernel: mlp_forward.1
= control target key start
LH: loop header
LB: loop body
LE: loop exit
PB: predicated region body
PF: predicated region fallthrough
CT: control target
= control target key end

     0   :  { %v589_v1 = vmov 0.0   ;;  %vm590_vm0 = vmmov 0   ;;  %v62_v34 = vlaneseq  ;;  %s760_s1 = inlined_call_operand.vmem [shape: bf16[256,128], index: 1, kind: input, shape index: {}]   ;;  %s761_s0 = inlined_call_operand.vmem [shape: bf16[8,256], index: 0, kind: input, shape index: {}]   ;;  %s762_s3 = inlined_call_operand.vmem [shape: bf16[128,128], index: 3, kind: input, shape index: {}]   ;;  %s763_s5 = inlined_call_operand.vmem [shape: bf16[128,128], index: 5, kind: input, shape index: {}]   ;;  %s764_s2 = inlined_call_operand.vmem [shape: bf16[1,128], index: 2, kind: input, shape index: {}]   ;;  %s765_s4 = inlined_call_operand.vmem [shape: bf16[1,128], index: 4, kind: input, shape index: {}]   ;;  %s766_s6 = inlined_call_operand.vmem [shape: bf16[1,128], index: 6, kind: input, shape index: {}]   ;;  %s767_s7 = inlined_call_operand.vmem [shape: bf16[8,128], index: 7, kind: output, shape index: {}]  }
   0x1   :  { %v555_v0 = vld [vmem:[%s760_s1 + $0x40] sm:$0xff]   ;;  %513 = vmatprep.subr.bf16.mxu1 %v589_v1  ;;  %v557_v3 = vld [vmem:[%s760_s1 + $0x48] sm:$0xff]   ;;  %v559_v5 = vld [vmem:[%s760_s1 + $0x50] sm:$0xff]   ;;  %529 = vmatprep.mubr.msk.bf16.mxu1 %vm590_vm0, %v589_v1 }
   0x2   :  { %v556_v2 = vld [vmem:[%s760_s1] sm:$0xff]   ;;  %473 = vmatprep.subr.bf16.mxu0 %v555_v0  ;;  %v558_v4 = vld [vmem:[%s760_s1 + $0x8] sm:$0xff]   ;;  %v560_v6 = vld [vmem:[%s760_s1 + $0x10] sm:$0xff]   ;;  %v63_v35 = vshrl.u32 %v62_v34, 7 }
   0x3   :  { %474 = vmatpush3.bf16.msra.mxu0 %v556_v2  ;;  %v561_v7 = vld [vmem:[%s760_s1 + $0x58] sm:$0xff]   ;;  %v563_v9 = vld [vmem:[%s760_s1 + $0x60] sm:$0xff]   ;;  %v565_v11 = vld [vmem:[%s760_s1 + $0x68] sm:$0xff]  }
   0x4   :  { %475 = vmatprep.subr.bf16.mxu0 %v557_v3  ;;  %v562_v8 = vld [vmem:[%s760_s1 + $0x18] sm:$0xff]   ;;  %v564_v10 = vld [vmem:[%s760_s1 + $0x20] sm:$0xff]   ;;  %v566_v15 = vld [vmem:[%s760_s1 + $0x28] sm:$0xff]   ;;  %v64_v38 = vsub.s32 0, %v63_v35 }
   0x5   :  { %v27_v12 = vld [vmem:[%s761_s0] sm:$0xff]  ;;  %v567_v16 = vld [vmem:[%s760_s1 + $0x70] sm:$0xff]   ;;  %v574_v17 = vld [vmem:[%s762_s3 + $0x8] sm:$0xff]  }
   0x6   :  { %v440_v13 = vcombine.high %v27_v12, %v27_v12  ;;  %v573_v14 = vld [vmem:[%s762_s3] sm:$0xff]   ;;  %v568_v18 = vld [vmem:[%s760_s1 + $0x30] sm:$0xff]   ;;  %v569_v19 = vld [vmem:[%s760_s1 + $0x78] sm:$0xff]   ;;  %v439_v23 = vcombine.low %v27_v12, %v27_v12 }
   0x7   :  { %476 = vmatpush3.bf16.msra.mxu0 %v558_v4  ;;  %514 = vmatpush3.bf16.msra.mxu1 %v573_v14  ;;  %v575_v20 = vld [vmem:[%s762_s3 + $0x10] sm:$0xff]   ;;  %v570_v21 = vld [vmem:[%s760_s1 + $0x38] sm:$0xff]   ;;  %v577_v24 = vld [vmem:[%s762_s3 + $0x20] sm:$0xff]  }
   0x8   :  { %477 = vmatprep.subr.bf16.mxu0 %v559_v5  ;;  %201 = vmatprep.mubr.bf16.mxu0 %v440_v13  ;;  %v576_v22 = vld [vmem:[%s762_s3 + $0x18] sm:$0xff]   ;;  %v578_v25 = vld [vmem:[%s762_s3 + $0x28] sm:$0xff]   ;;  %v579_v26 = vld [vmem:[%s762_s3 + $0x30] sm:$0xff]  }
   0x9   :  { %515 = vmatprep.subr.bf16.mxu1 %v589_v1  ;;  %v580_v27 = vld [vmem:[%s762_s3 + $0x38] sm:$0xff]   ;;  %v581_v28 = vld [vmem:[%s763_s5] sm:$0xff]   ;;  %v582_v29 = vld [vmem:[%s763_s5 + $0x8] sm:$0xff]  }
   0xa   :  { %v583_v30 = vld [vmem:[%s763_s5 + $0x10] sm:$0xff]   ;;  %v584_v31 = vld [vmem:[%s763_s5 + $0x18] sm:$0xff]   ;;  %v585_v32 = vld [vmem:[%s763_s5 + $0x20] sm:$0xff]  }
   0xb   :  { %478 = vmatpush3.bf16.msra.mxu0 %v560_v6  ;;  %516 = vmatpush3.bf16.msra.mxu1 %v574_v17  ;;  %v586_v33 = vld [vmem:[%s763_s5 + $0x28] sm:$0xff]   ;;  %v60_v36 = vld [vmem:[%s764_s2] sm:$0x1]  ;;  %v587_v48 = vld [vmem:[%s763_s5 + $0x30] sm:$0xff]  }
   0xc   :  { %479 = vmatprep.subr.bf16.mxu0 %v561_v7  ;;  %517 = vmatprep.subr.bf16.mxu1 %v589_v1  ;;  %v61_v37 = vunpack.c.l.bf16 %v60_v36  ;;  %v588_v49 = vld [vmem:[%s763_s5 + $0x38] sm:$0xff]   ;;  %v227_v50 = vld [vmem:[%s765_s4] sm:$0x1] }
   0xd   :  { %v228_v51 = vunpack.c.l.bf16 %v227_v50  ;;  %v339_v60 = vld [vmem:[%s766_s6] sm:$0x1] }
   0xe   :  { %v65_v40 = vrot.slane %v61_v37, %v64_v38  ;;  %v340_v61 = vunpack.c.l.bf16 %v339_v60 }
   0xf   :  { %480 = vmatpush3.bf16.msra.mxu0 %v562_v8  ;;  %518 = vmatpush3.bf16.msra.mxu1 %v575_v20  ;;  %v232_v52 = vrot.slane %v228_v51, %v64_v38 }
  0x10   :  { %481 = vmatprep.subr.bf16.mxu0 %v563_v9  ;;  %519 = vmatprep.subr.bf16.mxu1 %v589_v1  ;;  %v344_v62 = vrot.slane %v340_v61, %v64_v38 }
  0x13   :  { %482 = vmatpush3.bf16.msra.mxu0 %v564_v10  ;;  %520 = vmatpush3.bf16.msra.mxu1 %v576_v22 }
  0x14   :  { %483 = vmatprep.subr.bf16.mxu0 %v565_v11  ;;  %521 = vmatprep.subr.bf16.mxu1 %v589_v1 }
  0x17   :  { %484 = vmatpush3.bf16.msra.mxu0 %v566_v15  ;;  %522 = vmatpush3.bf16.msra.mxu1 %v577_v24 }
  0x18   :  { %485 = vmatprep.subr.bf16.mxu0 %v567_v16  ;;  %523 = vmatprep.subr.bf16.mxu1 %v589_v1 }
  0x1b   :  { %486 = vmatpush3.bf16.msra.mxu0 %v568_v18  ;;  %524 = vmatpush3.bf16.msra.mxu1 %v578_v25 }
  0x1c   :  { %487 = vmatprep.subr.bf16.mxu0 %v569_v19  ;;  %525 = vmatprep.subr.bf16.mxu1 %v589_v1 }
  0x1f   :  { %488 = vmatpush3.bf16.msra.mxu0 %v570_v21  ;;  %526 = vmatpush3.bf16.msra.mxu1 %v579_v26 }
  0x20   :  { %533 = vmatprep.subr.bf16.mxu0 %v589_v1  ;;  %527 = vmatprep.subr.bf16.mxu1 %v589_v1 }
  0x22   :  { %202 = vmatmul.mubr.bf16.vlgmr.msra.gmra.mrb[0].mxu0 %v439_v23 }
  0x23   :  { %528 = vmatpush3.bf16.msra.mxu1 %v580_v27  ;;  %549 = vmatprep.mubr.msk.bf16.mxu0 %vm590_vm0, %v589_v1 }
  0x24   :  { %534 = vmatpush3.bf16.msra.mxu0 %v581_v28 }
  0x25   :  { %535 = vmatprep.subr.bf16.mxu0 %v589_v1 }
  0x28   :  { %536 = vmatpush3.bf16.msra.mxu0 %v582_v29 }
  0x29   :  { %537 = vmatprep.subr.bf16.mxu0 %v589_v1 }
  0x2c   :  { %538 = vmatpush3.bf16.msra.mxu0 %v583_v30 }
  0x2d   :  { %539 = vmatprep.subr.bf16.mxu0 %v589_v1 }
  0x30   :  { %540 = vmatpush3.bf16.msra.mxu0 %v584_v31 }
  0x31   :  { %541 = vmatprep.subr.bf16.mxu0 %v589_v1 }
  0x34   :  { %542 = vmatpush3.bf16.msra.mxu0 %v585_v32 }
  0x35   :  { %543 = vmatprep.subr.bf16.mxu0 %v589_v1 }
  0x38   :  { %544 = vmatpush3.bf16.msra.mxu0 %v586_v33 }
  0x39   :  { %545 = vmatprep.subr.bf16.mxu0 %v589_v1 }
  0x3c   :  { %546 = vmatpush3.bf16.msra.mxu0 %v587_v48 }
  0x3d   :  { %547 = vmatprep.subr.bf16.mxu0 %v589_v1 }
  0x40   :  { %548 = vmatpush3.bf16.msra.mxu0 %v588_v49 }
  0xf5   :  { %v489_v39 = vpop.f32.mrb[0].mxu0 }
  0xf6   :  { %v490_v41 = vpop.f32.mrb[1].mxu0 }
  0xf7   :  { %v491_v42 = vadd.f32 %v490_v41, %v489_v39  ;;  %v492_v43 = vpop.f32.mrb[2].mxu0 }
  0xf8   :  { %v493_v44 = vpop.f32.mrb[3].mxu0 }
  0xf9   :  { %v204_v45 = vadd.f32 %v491_v42, %v65_v40 }
  0xfb   :  { %v209_v46 = vmax.f32 %v204_v45, 0.0 }
  0xfd   :  { %v210_v47 = vpack.c.bf16 %v209_v46, %v209_v46 }
  0xff   :  { %530 = vmatmul.mubr.bf16.vlgmr.msra.gmra.mrb[0].mxu1 %v210_v47 }
 0x1d2   :  { %v315_v53 = vpop.f32.mrb[0].mxu1 }
 0x1d3   :  { %v316_v54 = vadd.f32 %v315_v53, %v232_v52  ;;  %v531_v55 = vpop.f32.mrb[1].mxu1 }
 0x1d4   :  { %v318_v56 = vpop.f32.mrb[2].mxu1 }
 0x1d5   :  { %v321_v57 = vmax.f32 %v316_v54, 0.0  ;;  %v532_v58 = vpop.f32.mrb[3].mxu1 }
 0x1d7   :  { %v322_v59 = vpack.c.bf16 %v321_v57, %v321_v57 }
 0x1d9   :  { %550 = vmatmul.mubr.bf16.vlgmr.msra.gmra.mrb[4].mxu0 %v322_v59 }
 0x2ac   :  { %v427_v63 = vpop.f32.mrb[4].mxu0 }
 0x2ad   :  { %v428_v0 = vadd.f32 %v427_v63, %v344_v62  ;;  %v551_v1 = vpop.f32.mrb[5].mxu0 }
 0x2ae   :  { %v430_v2 = vpop.f32.mrb[6].mxu0 }
 0x2af   :  { %v433_v3 = vpack.c.bf16 %v428_v0, %v428_v0  ;;  %v552_v4 = vpop.f32.mrb[7].mxu0 }
 0x2b1   :  { %434 = vst [vmem:[%s767_s7] sm:$0xf] %v433_v3 }

</bundles_post_ra>
